<compile_context>
chip_gen: v7x
topology: tpu7x:2x2x1
jax: 0.10.0
libtpu: 0.0.40
codegen_flags: <defaults>
</compile_context>

<pallas_src>
import functools

import jax
import jax.numpy as jnp
import numpy as np
from jax.experimental import pallas as pl
from jax.experimental.pallas import tpu as pltpu

EPS = 1e-8
LANES = 128
SUBLANES = 8
MAX_BLOCK_ROWS = 8192          # 8192x128 f32 block = 4 MiB

# VMEM vector-accumulator slots (each slot is one (8, 128) f32 vreg tile)
_MIN1, _MAX1, _MIN2, _MAX2, _SUM, _SUMSQ = 0, 1, 2, 3, 4, 5
_SUM1, _CNT1, _SUM2, _CNT2 = 6, 7, 8, 9
_NVEC = 10

# SMEM scalar slots
_PILOT, _A, _B, _THR = 0, 1, 2, 3
_NSMEM = 4


def _nss_kernel(pred_ref, gtd_ref, out_ref, vacc_ref, sacc_ref, *,
                n, blk_r, n_tiles):
    phase = pl.program_id(0)            # 0: moments, 1: NSS accumulation
    tile = pl.program_id(1)             # grid-order tile index
    last = n_tiles - 1                  # static python int
    # palindromic traversal: phase 0 walks data tiles forward, phase 1 backward
    data_tile = (1 - phase) * tile + phase * (last - tile)
    blk_elems = blk_r * LANES
    has_tail = (n % blk_elems) != 0                 # static python bool
    tail_rem = n - last * blk_elems                 # static: valid elems in last data tile
    nf = jnp.float32(n)
    nvregs = blk_r // SUBLANES

    def load_f32():
        # upcast per tile in VMEM (inputs may be bf16/f16)
        return pred_ref[...].astype(jnp.float32), gtd_ref[...].astype(jnp.float32)

    def tail_mask():
        row = jax.lax.broadcasted_iota(jnp.int32, (blk_r, LANES), 0)
        col = jax.lax.broadcasted_iota(jnp.int32, (blk_r, LANES), 1)
        return (row * LANES + col) < tail_rem

    # fold (blk_r, 128) -> (8, 128): elementwise VPU reduce across vregs only,
    # no cross-lane/sublane XLU work per tile.
    def fold_min(x):
        return jnp.min(x.reshape(nvregs, SUBLANES, LANES), axis=0)

    def fold_max(x):
        return jnp.max(x.reshape(nvregs, SUBLANES, LANES), axis=0)

    def fold_sum(x):
        return jnp.sum(x.reshape(nvregs, SUBLANES, LANES), axis=0)

    def phase0_accum(valid):
        p, g = load_f32()
        pc = p - sacc_ref[_PILOT]           # pilot-centered (well-conditioned moments)
        if valid is None:
            p_min = p_max = p
            g_min = g_max = g
            pc_s = pc
        else:
            pos = jnp.float32(jnp.inf)
            neg = jnp.float32(-jnp.inf)
            p_min = jnp.where(valid, p, pos)
            p_max = jnp.where(valid, p, neg)
            g_min = jnp.where(valid, g, pos)
            g_max = jnp.where(valid, g, neg)
            pc_s = jnp.where(valid, pc, 0.0)
        vacc_ref[_MIN1] = jnp.minimum(vacc_ref[_MIN1], fold_min(p_min))
        vacc_ref[_MAX1] = jnp.maximum(vacc_ref[_MAX1], fold_max(p_max))
        vacc_ref[_MIN2] = jnp.minimum(vacc_ref[_MIN2], fold_min(g_min))
        vacc_ref[_MAX2] = jnp.maximum(vacc_ref[_MAX2], fold_max(g_max))
        vacc_ref[_SUM] = vacc_ref[_SUM] + fold_sum(pc_s)
        vacc_ref[_SUMSQ] = vacc_ref[_SUMSQ] + fold_sum(pc_s * pc_s)

    def phase1_accum(valid):
        p, g = load_f32()
        a = sacc_ref[_A]
        b = sacc_ref[_B]
        thr = sacc_ref[_THR]
        # == pred_standardized * gtd_bin (gtd_bin is 0/1), with one fewer cast+mul
        nss = jnp.where(g > thr, p * a + b, 0.0)
        m1 = nss > jnp.float32(0.1)
        m2 = nss > jnp.float32(-1e-8)
        if valid is not None:
            m1 = jnp.logical_and(m1, valid)
            m2 = jnp.logical_and(m2, valid)
        vacc_ref[_SUM1] = vacc_ref[_SUM1] + fold_sum(jnp.where(m1, nss, 0.0))
        vacc_ref[_CNT1] = vacc_ref[_CNT1] + fold_sum(m1.astype(jnp.float32))
        vacc_ref[_SUM2] = vacc_ref[_SUM2] + fold_sum(jnp.where(m2, nss, 0.0))
        vacc_ref[_CNT2] = vacc_ref[_CNT2] + fold_sum(m2.astype(jnp.float32))

    def run_tile(accum_fn):
        # mask only the (single possible) partial tail DATA tile (index `last`
        # regardless of traversal direction); full tiles run unmasked.
        if not has_tail:
            accum_fn(None)
        elif n_tiles == 1:
            accum_fn(tail_mask())
        else:
            @pl.when(data_tile != last)
            def _():
                accum_fn(None)

            @pl.when(data_tile == last)
            def _():
                accum_fn(tail_mask())

    # ---- init accumulators + pilot on the very first grid step ----
    @pl.when(jnp.logical_and(phase == 0, tile == 0))
    def _():
        inf = jnp.full((SUBLANES, LANES), jnp.inf, jnp.float32)
        zero = jnp.zeros((SUBLANES, LANES), jnp.float32)
        vacc_ref[_MIN1] = inf
        vacc_ref[_MAX1] = -inf
        vacc_ref[_MIN2] = inf
        vacc_ref[_MAX2] = -inf
        vacc_ref[_SUM] = zero
        vacc_ref[_SUMSQ] = zero
        vacc_ref[_SUM1] = zero
        vacc_ref[_CNT1] = zero
        vacc_ref[_SUM2] = zero
        vacc_ref[_CNT2] = zero
        # pilot = first element (always valid since n >= 1): centers the
        # second-moment accumulation so f32 cancellation cannot blow up.
        sacc_ref[_PILOT] = pred_ref[0, 0].astype(jnp.float32)

    # ---- phase 0: global min/max + pilot-centered first/second moments ----
    @pl.when(phase == 0)
    def _():
        run_tile(phase0_accum)

    # ---- phase 0 finalize: one XLU reduce, fold affine transforms to scalars ----
    @pl.when(jnp.logical_and(phase == 0, tile == last))
    def _():
        min1 = jnp.min(vacc_ref[_MIN1])
        max1 = jnp.max(vacc_ref[_MAX1])
        min2 = jnp.min(vacc_ref[_MIN2])
        max2 = jnp.max(vacc_ref[_MAX2])
        sum_c = jnp.sum(vacc_ref[_SUM])
        sumsq_c = jnp.sum(vacc_ref[_SUMSQ])
        inv1 = 1.0 / (max1 - min1 + EPS)                 # scalar, computed once
        mean_raw = sacc_ref[_PILOT] + sum_c / nf
        # unbiased variance from pilot-centered moments; equals
        # torch.std(ddof=1) on the min-max-normalized map up to fp rounding.
        # n == 1 -> 0/0 -> NaN, same degenerate behavior as torch.std.
        var_raw = (sumsq_c - sum_c * sum_c / nf) / (nf - 1.0)
        std_n = jnp.sqrt(jnp.maximum(var_raw, 0.0)) * inv1
        a = inv1 / (std_n + EPS)
        sacc_ref[_A] = a
        sacc_ref[_B] = -mean_raw * a
        # (g - min2)/(max2 - min2 + eps) > 0.5   <=>   g > thr   (raw domain)
        sacc_ref[_THR] = min2 + 0.5 * (max2 - min2 + EPS)

    # ---- phase 1: thresholded NSS sums / counts ----
    @pl.when(phase == 1)
    def _():
        run_tile(phase1_accum)

    # ---- finalize: select threshold set, write the negated mean ----
    @pl.when(jnp.logical_and(phase == 1, tile == last))
    def _():
        sum1 = jnp.sum(vacc_ref[_SUM1])
        cnt1 = jnp.sum(vacc_ref[_CNT1])
        sum2 = jnp.sum(vacc_ref[_SUM2])
        cnt2 = jnp.sum(vacc_ref[_CNT2])
        # Both where-branches evaluate: when cnt1 == 0 the first branch is a
        # harmless 0/0; cnt2 == 0 only in the degenerate case where the
        # PyTorch reference also returns NaN (mean of an empty tensor).
        mean_sel = jnp.where(cnt1 > 0.0, sum1 / cnt1, sum2 / cnt2)
        out_ref[0, 0] = -mean_sel


def nss_loss(map_pred, map_gtd, *, max_block_rows=MAX_BLOCK_ROWS):
    pred = jnp.asarray(map_pred).reshape(-1)
    gtd = jnp.asarray(map_gtd).reshape(-1)
    if pred.shape[0] != gtd.shape[0]:
        raise ValueError("map_pred and map_gtd must have the same element count")
    n = int(pred.shape[0])
    if n == 0:
        raise ValueError("empty input")

    # keep narrow float dtypes (bf16/f16): the kernel upcasts per tile in VMEM,
    # halving HBM traffic compared to casting to f32 in the wrapper.
    if pred.dtype not in (jnp.float32, jnp.bfloat16, jnp.float16):
        pred = pred.astype(jnp.float32)
    if gtd.dtype not in (jnp.float32, jnp.bfloat16, jnp.float16):
        gtd = gtd.astype(jnp.float32)

    # lane-dense (rows, 128) view; reshape is free whenever n % 128 == 0
    # (the common case).  Only a sub-128 remainder is padded; the kernel masks
    # the tail tile so pad / block-padding values never affect the result.
    rows = -(-n // LANES)
    if rows * LANES != n:
        pred = jnp.pad(pred, (0, rows * LANES - n))
        gtd = jnp.pad(gtd, (0, rows * LANES - n))
    pred2 = pred.reshape(rows, LANES)
    gtd2 = gtd.reshape(rows, LANES)

    rows8 = -(-rows // SUBLANES) * SUBLANES     # rows rounded up to sublane multiple

    # --- generation-aware block sizing (v7x: 64 MiB VMEM; v5e/v6e: 128 MiB) ---
    try:
        vmem_cap = int(pltpu.get_tpu_info().vmem_capacity_bytes)
    except Exception:
        vmem_cap = 64 * 1024 * 1024             # conservative (v7x) fallback
    # in-flight pipeline footprint = 2 inputs x 2 buffers x block bytes
    in_flight_budget = min(vmem_cap // 3, 64 * 1024 * 1024)
    bytes_per_row = LANES * (pred2.dtype.itemsize + gtd2.dtype.itemsize)
    blk_r_cap = max(SUBLANES, in_flight_budget // (2 * bytes_per_row))
    # single-block whenever the whole array fits the budget (=> one HBM pass:
    # phase 1 reuses the resident block since its block index is unchanged).
    blk_r = min(max_block_rows, blk_r_cap, rows8)
    blk_r = max(SUBLANES, (blk_r // SUBLANES) * SUBLANES)
    n_tiles = -(-rows // blk_r)
    last = n_tiles - 1

    in_flight_bytes = 2 * blk_r * bytes_per_row
    vmem_limit = int(min(vmem_cap, max(32 * 1024 * 1024,
                                       in_flight_bytes + 8 * 1024 * 1024)))

    kernel = functools.partial(_nss_kernel, n=n, blk_r=blk_r, n_tiles=n_tiles)
    # phase 0 walks data tiles forward, phase 1 backward (palindromic), so the
    # block at the phase boundary is already resident and its DMA is elided.
    tile_map = lambda ph, i: ((1 - ph) * i + ph * (last - i), 0)

    cost = pl.CostEstimate(
        flops=10 * n,
        transcendentals=1,
        bytes_accessed=2 * n * (pred2.dtype.itemsize + gtd2.dtype.itemsize),
    )

    out = pl.pallas_call(
        kernel,
        out_shape=jax.ShapeDtypeStruct((1, 1), jnp.float32),
        grid_spec=pltpu.PrefetchScalarGridSpec(
            num_scalar_prefetch=0,
            grid=(2, n_tiles),                        # (phase, row-tile)
            in_specs=[
                pl.BlockSpec((blk_r, LANES), tile_map),
                pl.BlockSpec((blk_r, LANES), tile_map),
            ],
            out_specs=pl.BlockSpec((1, 1), lambda ph, i: (0, 0),
                                   memory_space=pltpu.MemorySpace.SMEM),
            scratch_shapes=[
                pltpu.VMEM((_NVEC, SUBLANES, LANES), jnp.float32),
                pltpu.SMEM((_NSMEM,), jnp.float32),
            ],
        ),
        compiler_params=pltpu.CompilerParams(
            # phase 1 depends on phase-0 scalars and every tile accumulates into
            # the same scratch -> both axes must stay sequential.
            dimension_semantics=("arbitrary", "arbitrary"),
            vmem_limit_bytes=vmem_limit,
        ),
        cost_estimate=cost,
    )(pred2, gtd2)
    return out[0, 0]


def _numpy_reference(map_pred, map_gtd):
    p = np.asarray(map_pred, np.float32).reshape(-1)
    g = np.asarray(map_gtd, np.float32).reshape(-1)
    p = (p - p.min()) / (p.max() - p.min() + EPS)
    g = (g - g.min()) / (g.max() - g.min() + EPS)
    gb = (g > 0.5).astype(np.float32)
    p = (p - p.mean()) / (p.std(ddof=1) + EPS)
    nss = p * gb
    big = nss[nss > 0.1]
    if big.size == 0:
        big = nss[nss > -1e-8]
    return -big.mean()


if __name__ == "__main__":
    key = jax.random.PRNGKey(0)
    k1, k2, k3, k4, k5, k6, k7, k8, k9, k10 = jax.random.split(key, 10)

    cases = []

    # 1) small NCHW saliency maps, f32, tile-aligned (single block, unmasked)
    cases.append((jax.random.normal(k1, (2, 4, 16, 16), dtype=jnp.float32),
                  jax.random.uniform(k2, (2, 4, 16, 16), dtype=jnp.float32),
                  MAX_BLOCK_ROWS))

    # 2) ragged element count -> masked tail within a single block
    cases.append((jax.random.normal(k3, (1, 3, 10, 13), dtype=jnp.float32),
                  jax.random.uniform(k4, (1, 3, 10, 13), dtype=jnp.float32),
                  MAX_BLOCK_ROWS))

    # 3) bf16 pred ingestion, single-block fast path (one HBM pass)
    cases.append((jax.random.normal(k5, (1, 2, 192, 192), dtype=jnp.float32).astype(jnp.bfloat16),
                  jax.random.uniform(k6, (1, 2, 192, 192), dtype=jnp.float32),
                  MAX_BLOCK_ROWS))

    # 4) forced multi-tile (small block override) -> palindromic traversal, no tail
    cases.append((jax.random.normal(k7, (1, 2, 192, 192), dtype=jnp.float32),
                  jax.random.uniform(k8, (1, 2, 192, 192), dtype=jnp.float32),
                  64))

    # 5) forced multi-tile with a masked tail tile (ragged count)
    cases.append((jax.random.normal(k9, (1, 2, 190, 193), dtype=jnp.float32),
                  jax.random.uniform(k10, (1, 2, 190, 193), dtype=jnp.float32),
                  64))

    for mp, mg, mbr in cases:
        loss = jax.block_until_ready(nss_loss(mp, mg, max_block_rows=mbr))
        ref = _numpy_reference(np.asarray(mp.astype(jnp.float32)),
                               np.asarray(mg.astype(jnp.float32)))
        assert np.isfinite(float(loss)), (mp.shape, float(loss))
        assert abs(float(loss) - float(ref)) < 1e-3, (mp.shape, float(loss), float(ref))

    print("KERNEL_OK")
</pallas_src>

<mosaic_0001>
module attributes {stable_mosaic.version = 11 : i64} {
  func.func @_nss_kernel(%arg0: i32, %arg1: i32, %arg2: memref<16x128xf32, #tpu.memory_space<vmem>>, %arg3: memref<16x128xf32, #tpu.memory_space<vmem>>, %arg4: memref<1x1xf32, #tpu.memory_space<smem>>, %arg5: memref<10x8x128xf32, #tpu.memory_space<vmem>>, %arg6: memref<4xf32, #tpu.memory_space<smem>>) attributes {dimension_semantics = [#tpu.dimension_semantics<arbitrary>, #tpu.dimension_semantics<arbitrary>], iteration_bounds = array<i64: 2, 1>, scalar_prefetch = 0 : i64, scratch_operands = 2 : i64, tpu.core_type = #tpu.core_type<tc>, window_params = [{transform_indices = @transform_0, window_bounds = array<i64: 16, 128>}, {transform_indices = @transform_1, window_bounds = array<i64: 16, 128>}, {transform_indices = @transform_2, window_bounds = array<i64: 1, 1>}]} {
    %c0_i32 = arith.constant 0 : i32
    %0 = arith.cmpi eq, %arg0, %c0_i32 : i32
    %c0_i32_0 = arith.constant 0 : i32
    %1 = arith.cmpi eq, %arg1, %c0_i32_0 : i32
    %2 = arith.andi %0, %1 : i1
    %3 = arith.extui %2 : i1 to i32
    %c0_i32_1 = arith.constant 0 : i32
    %4 = arith.cmpi ne, %3, %c0_i32_1 : i32
    scf.if %4 {
      %cst_11 = arith.constant 0x7F800000 : f32
      %21 = vector.broadcast %cst_11 : f32 to vector<8x128xf32>
      %cst_12 = arith.constant 0.000000e+00 : f32
      %22 = vector.broadcast %cst_12 : f32 to vector<8x128xf32>
      %c0 = arith.constant 0 : index
      %c0_13 = arith.constant 0 : index
      %c0_14 = arith.constant 0 : index
      %23 = vector.load %arg5[%c0, %c0_13, %c0_14] : memref<10x8x128xf32, #tpu.memory_space<vmem>>, vector<1x8x128xf32>
      %24 = vector.shape_cast %23 : vector<1x8x128xf32> to vector<8x128xf32>
      %25 = vector.shape_cast %21 : vector<8x128xf32> to vector<1x8x128xf32>
      tpu.vector_store %arg5[%c0, %c0_13, %c0_14], %25 {strides = array<i32>} : memref<10x8x128xf32, #tpu.memory_space<vmem>>, vector<1x8x128xf32>,
      %cst_15 = arith.constant 0.000000e+00 : f32
      %26 = vector.broadcast %cst_15 : f32 to vector<8x128xf32>
      %27 = arith.subf %26, %21 : vector<8x128xf32>
      %c1 = arith.constant 1 : index
      %c0_16 = arith.constant 0 : index
      %c0_17 = arith.constant 0 : index
      %28 = vector.load %arg5[%c1, %c0_16, %c0_17] : memref<10x8x128xf32, #tpu.memory_space<vmem>>, vector<1x8x128xf32>
      %29 = vector.shape_cast %28 : vector<1x8x128xf32> to vector<8x128xf32>
      %30 = vector.shape_cast %27 : vector<8x128xf32> to vector<1x8x128xf32>
      tpu.vector_store %arg5[%c1, %c0_16, %c0_17], %30 {strides = array<i32>} : memref<10x8x128xf32, #tpu.memory_space<vmem>>, vector<1x8x128xf32>,
      %c2 = arith.constant 2 : index
      %c0_18 = arith.constant 0 : index
      %c0_19 = arith.constant 0 : index
      %31 = vector.load %arg5[%c2, %c0_18, %c0_19] : memref<10x8x128xf32, #tpu.memory_space<vmem>>, vector<1x8x128xf32>
      %32 = vector.shape_cast %31 : vector<1x8x128xf32> to vector<8x128xf32>
      %33 = vector.shape_cast %21 : vector<8x128xf32> to vector<1x8x128xf32>
      tpu.vector_store %arg5[%c2, %c0_18, %c0_19], %33 {strides = array<i32>} : memref<10x8x128xf32, #tpu.memory_space<vmem>>, vector<1x8x128xf32>,
      %cst_20 = arith.constant 0.000000e+00 : f32
      %34 = vector.broadcast %cst_20 : f32 to vector<8x128xf32>
      %35 = arith.subf %34, %21 : vector<8x128xf32>
      %c3 = arith.constant 3 : index
      %c0_21 = arith.constant 0 : index
      %c0_22 = arith.constant 0 : index
      %36 = vector.load %arg5[%c3, %c0_21, %c0_22] : memref<10x8x128xf32, #tpu.memory_space<vmem>>, vector<1x8x128xf32>
      %37 = vector.shape_cast %36 : vector<1x8x128xf32> to vector<8x128xf32>
      %38 = vector.shape_cast %35 : vector<8x128xf32> to vector<1x8x128xf32>
      tpu.vector_store %arg5[%c3, %c0_21, %c0_22], %38 {strides = array<i32>} : memref<10x8x128xf32, #tpu.memory_space<vmem>>, vector<1x8x128xf32>,
      %c4 = arith.constant 4 : index
      %c0_23 = arith.constant 0 : index
      %c0_24 = arith.constant 0 : index
      %39 = vector.load %arg5[%c4, %c0_23, %c0_24] : memref<10x8x128xf32, #tpu.memory_space<vmem>>, vector<1x8x128xf32>
      %40 = vector.shape_cast %39 : vector<1x8x128xf32> to vector<8x128xf32>
      %41 = vector.shape_cast %22 : vector<8x128xf32> to vector<1x8x128xf32>
      tpu.vector_store %arg5[%c4, %c0_23, %c0_24], %41 {strides = array<i32>} : memref<10x8x128xf32, #tpu.memory_space<vmem>>, vector<1x8x128xf32>,
      %c5 = arith.constant 5 : index
      %c0_25 = arith.constant 0 : index
      %c0_26 = arith.constant 0 : index
      %42 = vector.load %arg5[%c5, %c0_25, %c0_26] : memref<10x8x128xf32, #tpu.memory_space<vmem>>, vector<1x8x128xf32>
      %43 = vector.shape_cast %42 : vector<1x8x128xf32> to vector<8x128xf32>
      %44 = vector.shape_cast %22 : vector<8x128xf32> to vector<1x8x128xf32>
      tpu.vector_store %arg5[%c5, %c0_25, %c0_26], %44 {strides = array<i32>} : memref<10x8x128xf32, #tpu.memory_space<vmem>>, vector<1x8x128xf32>,
      %c6 = arith.constant 6 : index
      %c0_27 = arith.constant 0 : index
      %c0_28 = arith.constant 0 : index
      %45 = vector.load %arg5[%c6, %c0_27, %c0_28] : memref<10x8x128xf32, #tpu.memory_space<vmem>>, vector<1x8x128xf32>
      %46 = vector.shape_cast %45 : vector<1x8x128xf32> to vector<8x128xf32>
      %47 = vector.shape_cast %22 : vector<8x128xf32> to vector<1x8x128xf32>
      tpu.vector_store %arg5[%c6, %c0_27, %c0_28], %47 {strides = array<i32>} : memref<10x8x128xf32, #tpu.memory_space<vmem>>, vector<1x8x128xf32>,
      %c7 = arith.constant 7 : index
      %c0_29 = arith.constant 0 : index
      %c0_30 = arith.constant 0 : index
      %48 = vector.load %arg5[%c7, %c0_29, %c0_30] : memref<10x8x128xf32, #tpu.memory_space<vmem>>, vector<1x8x128xf32>
      %49 = vector.shape_cast %48 : vector<1x8x128xf32> to vector<8x128xf32>
      %50 = vector.shape_cast %22 : vector<8x128xf32> to vector<1x8x128xf32>
      tpu.vector_store %arg5[%c7, %c0_29, %c0_30], %50 {strides = array<i32>} : memref<10x8x128xf32, #tpu.memory_space<vmem>>, vector<1x8x128xf32>,
      %c8 = arith.constant 8 : index
      %c0_31 = arith.constant 0 : index
      %c0_32 = arith.constant 0 : index
      %51 = vector.load %arg5[%c8, %c0_31, %c0_32] : memref<10x8x128xf32, #tpu.memory_space<vmem>>, vector<1x8x128xf32>
      %52 = vector.shape_cast %51 : vector<1x8x128xf32> to vector<8x128xf32>
      %53 = vector.shape_cast %22 : vector<8x128xf32> to vector<1x8x128xf32>
      tpu.vector_store %arg5[%c8, %c0_31, %c0_32], %53 {strides = array<i32>} : memref<10x8x128xf32, #tpu.memory_space<vmem>>, vector<1x8x128xf32>,
      %c9 = arith.constant 9 : index
      %c0_33 = arith.constant 0 : index
      %c0_34 = arith.constant 0 : index
      %54 = vector.load %arg5[%c9, %c0_33, %c0_34] : memref<10x8x128xf32, #tpu.memory_space<vmem>>, vector<1x8x128xf32>
      %55 = vector.shape_cast %54 : vector<1x8x128xf32> to vector<8x128xf32>
      %56 = vector.shape_cast %22 : vector<8x128xf32> to vector<1x8x128xf32>
      tpu.vector_store %arg5[%c9, %c0_33, %c0_34], %56 {strides = array<i32>} : memref<10x8x128xf32, #tpu.memory_space<vmem>>, vector<1x8x128xf32>,
      %c0_35 = arith.constant 0 : index
      %c0_36 = arith.constant 0 : index
      %57 = vector.load %arg2[%c0_35, %c0_36] : memref<16x128xf32, #tpu.memory_space<vmem>>, vector<1x1xf32>
      %58 = vector.extract %57[0, 0] : f32 from vector<1x1xf32>
      %c0_37 = arith.constant 0 : index
      %59 = memref.load %arg6[%c0_37] : memref<4xf32, #tpu.memory_space<smem>>
      memref.store %58, %arg6[%c0_37] : memref<4xf32, #tpu.memory_space<smem>>
    } else {
    }
    %c0_i32_2 = arith.constant 0 : i32
    %5 = arith.cmpi eq, %arg0, %c0_i32_2 : i32
    %6 = arith.extui %5 : i1 to i32
    %c0_i32_3 = arith.constant 0 : i32
    %7 = arith.cmpi ne, %6, %c0_i32_3 : i32
    scf.if %7 {
      %c0 = arith.constant 0 : index
      %c0_11 = arith.constant 0 : index
      %21 = vector.load %arg2[%c0, %c0_11] : memref<16x128xf32, #tpu.memory_space<vmem>>, vector<16x128xf32>
      %c0_12 = arith.constant 0 : index
      %c0_13 = arith.constant 0 : index
      %22 = vector.load %arg3[%c0_12, %c0_13] : memref<16x128xf32, #tpu.memory_space<vmem>>, vector<16x128xf32>
      %c0_14 = arith.constant 0 : index
      %23 = memref.load %arg6[%c0_14] : memref<4xf32, #tpu.memory_space<smem>>
      %24 = vector.broadcast %23 : f32 to vector<16x128xf32>
      %25 = arith.subf %21, %24 : vector<16x128xf32>
      %c0_15 = arith.constant 0 : index
      %c0_16 = arith.constant 0 : index
      %c0_17 = arith.constant 0 : index
      %26 = vector.load %arg5[%c0_15, %c0_16, %c0_17] : memref<10x8x128xf32, #tpu.memory_space<vmem>>, vector<1x8x128xf32>
      %27 = vector.shape_cast %26 : vector<1x8x128xf32> to vector<8x128xf32>
      %28 = vector.shape_cast %21 : vector<16x128xf32> to vector<2x8x128xf32>
      %cst_18 = arith.constant dense<0x7F800000> : vector<8x128xf32>
      %29 = vector.multi_reduction <minimumf>, %28, %cst_18 [0] : vector<2x8x128xf32> to vector<8x128xf32>
      %30 = arith.minimumf %27, %29 : vector<8x128xf32>
      %c0_19 = arith.constant 0 : index
      %c0_20 = arith.constant 0 : index
      %c0_21 = arith.constant 0 : index
      %31 = vector.load %arg5[%c0_19, %c0_20, %c0_21] : memref<10x8x128xf32, #tpu.memory_space<vmem>>, vector<1x8x128xf32>
      %32 = vector.shape_cast %31 : vector<1x8x128xf32> to vector<8x128xf32>
      %33 = vector.shape_cast %30 : vector<8x128xf32> to vector<1x8x128xf32>
      tpu.vector_store %arg5[%c0_19, %c0_20, %c0_21], %33 {strides = array<i32>} : memref<10x8x128xf32, #tpu.memory_space<vmem>>, vector<1x8x128xf32>,
      %c1 = arith.constant 1 : index
      %c0_22 = arith.constant 0 : index
      %c0_23 = arith.constant 0 : index
      %34 = vector.load %arg5[%c1, %c0_22, %c0_23] : memref<10x8x128xf32, #tpu.memory_space<vmem>>, vector<1x8x128xf32>
      %35 = vector.shape_cast %34 : vector<1x8x128xf32> to vector<8x128xf32>
      %36 = vector.shape_cast %21 : vector<16x128xf32> to vector<2x8x128xf32>
      %cst_24 = arith.constant dense<0xFF800000> : vector<8x128xf32>
      %37 = vector.multi_reduction <maximumf>, %36, %cst_24 [0] : vector<2x8x128xf32> to vector<8x128xf32>
      %38 = arith.maximumf %35, %37 : vector<8x128xf32>
      %c1_25 = arith.constant 1 : index
      %c0_26 = arith.constant 0 : index
      %c0_27 = arith.constant 0 : index
      %39 = vector.load %arg5[%c1_25, %c0_26, %c0_27] : memref<10x8x128xf32, #tpu.memory_space<vmem>>, vector<1x8x128xf32>
      %40 = vector.shape_cast %39 : vector<1x8x128xf32> to vector<8x128xf32>
      %41 = vector.shape_cast %38 : vector<8x128xf32> to vector<1x8x128xf32>
      tpu.vector_store %arg5[%c1_25, %c0_26, %c0_27], %41 {strides = array<i32>} : memref<10x8x128xf32, #tpu.memory_space<vmem>>, vector<1x8x128xf32>,
      %c2 = arith.constant 2 : index
      %c0_28 = arith.constant 0 : index
      %c0_29 = arith.constant 0 : index
      %42 = vector.load %arg5[%c2, %c0_28, %c0_29] : memref<10x8x128xf32, #tpu.memory_space<vmem>>, vector<1x8x128xf32>
      %43 = vector.shape_cast %42 : vector<1x8x128xf32> to vector<8x128xf32>
      %44 = vector.shape_cast %22 : vector<16x128xf32> to vector<2x8x128xf32>
      %cst_30 = arith.constant dense<0x7F800000> : vector<8x128xf32>
      %45 = vector.multi_reduction <minimumf>, %44, %cst_30 [0] : vector<2x8x128xf32> to vector<8x128xf32>
      %46 = arith.minimumf %43, %45 : vector<8x128xf32>
      %c2_31 = arith.constant 2 : index
      %c0_32 = arith.constant 0 : index
      %c0_33 = arith.constant 0 : index
      %47 = vector.load %arg5[%c2_31, %c0_32, %c0_33] : memref<10x8x128xf32, #tpu.memory_space<vmem>>, vector<1x8x128xf32>
      %48 = vector.shape_cast %47 : vector<1x8x128xf32> to vector<8x128xf32>
      %49 = vector.shape_cast %46 : vector<8x128xf32> to vector<1x8x128xf32>
      tpu.vector_store %arg5[%c2_31, %c0_32, %c0_33], %49 {strides = array<i32>} : memref<10x8x128xf32, #tpu.memory_space<vmem>>, vector<1x8x128xf32>,
      %c3 = arith.constant 3 : index
      %c0_34 = arith.constant 0 : index
      %c0_35 = arith.constant 0 : index
      %50 = vector.load %arg5[%c3, %c0_34, %c0_35] : memref<10x8x128xf32, #tpu.memory_space<vmem>>, vector<1x8x128xf32>
      %51 = vector.shape_cast %50 : vector<1x8x128xf32> to vector<8x128xf32>
      %52 = vector.shape_cast %22 : vector<16x128xf32> to vector<2x8x128xf32>
      %cst_36 = arith.constant dense<0xFF800000> : vector<8x128xf32>
      %53 = vector.multi_reduction <maximumf>, %52, %cst_36 [0] : vector<2x8x128xf32> to vector<8x128xf32>
      %54 = arith.maximumf %51, %53 : vector<8x128xf32>
      %c3_37 = arith.constant 3 : index
      %c0_38 = arith.constant 0 : index
      %c0_39 = arith.constant 0 : index
      %55 = vector.load %arg5[%c3_37, %c0_38, %c0_39] : memref<10x8x128xf32, #tpu.memory_space<vmem>>, vector<1x8x128xf32>
      %56 = vector.shape_cast %55 : vector<1x8x128xf32> to vector<8x128xf32>
      %57 = vector.shape_cast %54 : vector<8x128xf32> to vector<1x8x128xf32>
      tpu.vector_store %arg5[%c3_37, %c0_38, %c0_39], %57 {strides = array<i32>} : memref<10x8x128xf32, #tpu.memory_space<vmem>>, vector<1x8x128xf32>,
      %c4 = arith.constant 4 : index
      %c0_40 = arith.constant 0 : index
      %c0_41 = arith.constant 0 : index
      %58 = vector.load %arg5[%c4, %c0_40, %c0_41] : memref<10x8x128xf32, #tpu.memory_space<vmem>>, vector<1x8x128xf32>
      %59 = vector.shape_cast %58 : vector<1x8x128xf32> to vector<8x128xf32>
      %60 = vector.shape_cast %25 : vector<16x128xf32> to vector<2x8x128xf32>
      %cst_42 = arith.constant dense<0.000000e+00> : vector<8x128xf32>
      %61 = vector.multi_reduction <add>, %60, %cst_42 [0] : vector<2x8x128xf32> to vector<8x128xf32>
      %62 = arith.addf %59, %61 : vector<8x128xf32>
      %c4_43 = arith.constant 4 : index
      %c0_44 = arith.constant 0 : index
      %c0_45 = arith.constant 0 : index
      %63 = vector.load %arg5[%c4_43, %c0_44, %c0_45] : memref<10x8x128xf32, #tpu.memory_space<vmem>>, vector<1x8x128xf32>
      %64 = vector.shape_cast %63 : vector<1x8x128xf32> to vector<8x128xf32>
      %65 = vector.shape_cast %62 : vector<8x128xf32> to vector<1x8x128xf32>
      tpu.vector_store %arg5[%c4_43, %c0_44, %c0_45], %65 {strides = array<i32>} : memref<10x8x128xf32, #tpu.memory_space<vmem>>, vector<1x8x128xf32>,
      %c5 = arith.constant 5 : index
      %c0_46 = arith.constant 0 : index
      %c0_47 = arith.constant 0 : index
      %66 = vector.load %arg5[%c5, %c0_46, %c0_47] : memref<10x8x128xf32, #tpu.memory_space<vmem>>, vector<1x8x128xf32>
      %67 = vector.shape_cast %66 : vector<1x8x128xf32> to vector<8x128xf32>
      %68 = arith.mulf %25, %25 : vector<16x128xf32>
      %69 = vector.shape_cast %68 : vector<16x128xf32> to vector<2x8x128xf32>
      %cst_48 = arith.constant dense<0.000000e+00> : vector<8x128xf32>
      %70 = vector.multi_reduction <add>, %69, %cst_48 [0] : vector<2x8x128xf32> to vector<8x128xf32>
      %71 = arith.addf %67, %70 : vector<8x128xf32>
      %c5_49 = arith.constant 5 : index
      %c0_50 = arith.constant 0 : index
      %c0_51 = arith.constant 0 : index
      %72 = vector.load %arg5[%c5_49, %c0_50, %c0_51] : memref<10x8x128xf32, #tpu.memory_space<vmem>>, vector<1x8x128xf32>
      %73 = vector.shape_cast %72 : vector<1x8x128xf32> to vector<8x128xf32>
      %74 = vector.shape_cast %71 : vector<8x128xf32> to vector<1x8x128xf32>
      tpu.vector_store %arg5[%c5_49, %c0_50, %c0_51], %74 {strides = array<i32>} : memref<10x8x128xf32, #tpu.memory_space<vmem>>, vector<1x8x128xf32>,
    } else {
    }
    %c0_i32_4 = arith.constant 0 : i32
    %8 = arith.cmpi eq, %arg0, %c0_i32_4 : i32
    %c0_i32_5 = arith.constant 0 : i32
    %9 = arith.cmpi eq, %arg1, %c0_i32_5 : i32
    %10 = arith.andi %8, %9 : i1
    %11 = arith.extui %10 : i1 to i32
    %cst = arith.constant 2.048000e+03 : f32
    %c0_i32_6 = arith.constant 0 : i32
    %12 = arith.cmpi ne, %11, %c0_i32_6 : i32
    scf.if %12 {
      %c0 = arith.constant 0 : index
      %c0_11 = arith.constant 0 : index
      %c0_12 = arith.constant 0 : index
      %21 = vector.load %arg5[%c0, %c0_11, %c0_12] : memref<10x8x128xf32, #tpu.memory_space<vmem>>, vector<1x8x128xf32>
      %22 = vector.shape_cast %21 : vector<1x8x128xf32> to vector<8x128xf32>
      %23 = vector.shape_cast %22 : vector<8x128xf32> to vector<1x8x128xf32>
      %cst_13 = arith.constant dense<0x7F800000> : vector<1xf32>
      %24 = vector.multi_reduction <minimumf>, %23, %cst_13 [1, 2] : vector<1x8x128xf32> to vector<1xf32>
      %25 = vector.shape_cast %24 : vector<1xf32> to vector<1x1x1xf32>
      %26 = vector.extract %25[0, 0, 0] : f32 from vector<1x1x1xf32>
      %c1 = arith.constant 1 : index
      %c0_14 = arith.constant 0 : index
      %c0_15 = arith.constant 0 : index
      %27 = vector.load %arg5[%c1, %c0_14, %c0_15] : memref<10x8x128xf32, #tpu.memory_space<vmem>>, vector<1x8x128xf32>
      %28 = vector.shape_cast %27 : vector<1x8x128xf32> to vector<8x128xf32>
      %29 = vector.shape_cast %28 : vector<8x128xf32> to vector<1x8x128xf32>
      %cst_16 = arith.constant dense<0xFF800000> : vector<1xf32>
      %30 = vector.multi_reduction <maximumf>, %29, %cst_16 [1, 2] : vector<1x8x128xf32> to vector<1xf32>
      %31 = vector.shape_cast %30 : vector<1xf32> to vector<1x1x1xf32>
      %32 = vector.extract %31[0, 0, 0] : f32 from vector<1x1x1xf32>
      %c2 = arith.constant 2 : index
      %c0_17 = arith.constant 0 : index
      %c0_18 = arith.constant 0 : index
      %33 = vector.load %arg5[%c2, %c0_17, %c0_18] : memref<10x8x128xf32, #tpu.memory_space<vmem>>, vector<1x8x128xf32>
      %34 = vector.shape_cast %33 : vector<1x8x128xf32> to vector<8x128xf32>
      %35 = vector.shape_cast %34 : vector<8x128xf32> to vector<1x8x128xf32>
      %cst_19 = arith.constant dense<0x7F800000> : vector<1xf32>
      %36 = vector.multi_reduction <minimumf>, %35, %cst_19 [1, 2] : vector<1x8x128xf32> to vector<1xf32>
      %37 = vector.shape_cast %36 : vector<1xf32> to vector<1x1x1xf32>
      %38 = vector.extract %37[0, 0, 0] : f32 from vector<1x1x1xf32>
      %c3 = arith.constant 3 : index
      %c0_20 = arith.constant 0 : index
      %c0_21 = arith.constant 0 : index
      %39 = vector.load %arg5[%c3, %c0_20, %c0_21] : memref<10x8x128xf32, #tpu.memory_space<vmem>>, vector<1x8x128xf32>
      %40 = vector.shape_cast %39 : vector<1x8x128xf32> to vector<8x128xf32>
      %41 = vector.shape_cast %40 : vector<8x128xf32> to vector<1x8x128xf32>
      %cst_22 = arith.constant dense<0xFF800000> : vector<1xf32>
      %42 = vector.multi_reduction <maximumf>, %41, %cst_22 [1, 2] : vector<1x8x128xf32> to vector<1xf32>
      %43 = vector.shape_cast %42 : vector<1xf32> to vector<1x1x1xf32>
      %44 = vector.extract %43[0, 0, 0] : f32 from vector<1x1x1xf32>
      %c4 = arith.constant 4 : index
      %c0_23 = arith.constant 0 : index
      %c0_24 = arith.constant 0 : index
      %45 = vector.load %arg5[%c4, %c0_23, %c0_24] : memref<10x8x128xf32, #tpu.memory_space<vmem>>, vector<1x8x128xf32>
      %46 = vector.shape_cast %45 : vector<1x8x128xf32> to vector<8x128xf32>
      %47 = vector.shape_cast %46 : vector<8x128xf32> to vector<1x8x128xf32>
      %cst_25 = arith.constant dense<0.000000e+00> : vector<1xf32>
      %48 = vector.multi_reduction <add>, %47, %cst_25 [1, 2] : vector<1x8x128xf32> to vector<1xf32>
      %49 = vector.shape_cast %48 : vector<1xf32> to vector<1x1x1xf32>
      %50 = vector.extract %49[0, 0, 0] : f32 from vector<1x1x1xf32>
      %c5 = arith.constant 5 : index
      %c0_26 = arith.constant 0 : index
      %c0_27 = arith.constant 0 : index
      %51 = vector.load %arg5[%c5, %c0_26, %c0_27] : memref<10x8x128xf32, #tpu.memory_space<vmem>>, vector<1x8x128xf32>
      %52 = vector.shape_cast %51 : vector<1x8x128xf32> to vector<8x128xf32>
      %53 = vector.shape_cast %52 : vector<8x128xf32> to vector<1x8x128xf32>
      %cst_28 = arith.constant dense<0.000000e+00> : vector<1xf32>
      %54 = vector.multi_reduction <add>, %53, %cst_28 [1, 2] : vector<1x8x128xf32> to vector<1xf32>
      %55 = vector.shape_cast %54 : vector<1xf32> to vector<1x1x1xf32>
      %56 = vector.extract %55[0, 0, 0] : f32 from vector<1x1x1xf32>
      %57 = arith.subf %32, %26 : f32
      %cst_29 = arith.constant 9.99999993E-9 : f32
      %58 = arith.addf %57, %cst_29 : f32
      %cst_30 = arith.constant 1.000000e+00 : f32
      %59 = arith.divf %cst_30, %58 : f32
      %c0_31 = arith.constant 0 : index
      %60 = memref.load %arg6[%c0_31] : memref<4xf32, #tpu.memory_space<smem>>
      %61 = arith.divf %50, %cst : f32
      %62 = arith.addf %60, %61 : f32
      %63 = arith.mulf %50, %50 : f32
      %64 = arith.divf %63, %cst : f32
      %65 = arith.subf %56, %64 : f32
      %cst_32 = arith.constant 1.000000e+00 : f32
      %66 = arith.subf %cst, %cst_32 : f32
      %67 = arith.divf %65, %66 : f32
      %cst_33 = arith.constant 0.000000e+00 : f32
      %68 = arith.maximumf %67, %cst_33 : f32
      %69 = math.sqrt %68 : f32
      %70 = arith.mulf %69, %59 : f32
      %cst_34 = arith.constant 9.99999993E-9 : f32
      %71 = arith.addf %70, %cst_34 : f32
      %72 = arith.divf %59, %71 : f32
      %c1_35 = arith.constant 1 : index
      %73 = memref.load %arg6[%c1_35] : memref<4xf32, #tpu.memory_space<smem>>
      memref.store %72, %arg6[%c1_35] : memref<4xf32, #tpu.memory_space<smem>>
      %cst_36 = arith.constant 0.000000e+00 : f32
      %74 = arith.subf %cst_36, %62 : f32
      %75 = arith.mulf %74, %72 : f32
      %c2_37 = arith.constant 2 : index
      %76 = memref.load %arg6[%c2_37] : memref<4xf32, #tpu.memory_space<smem>>
      memref.store %75, %arg6[%c2_37] : memref<4xf32, #tpu.memory_space<smem>>
      %77 = arith.subf %44, %38 : f32
      %cst_38 = arith.constant 9.99999993E-9 : f32
      %78 = arith.addf %77, %cst_38 : f32
      %cst_39 = arith.constant 5.000000e-01 : f32
      %79 = arith.mulf %cst_39, %78 : f32
      %80 = arith.addf %38, %79 : f32
      %c3_40 = arith.constant 3 : index
      %81 = memref.load %arg6[%c3_40] : memref<4xf32, #tpu.memory_space<smem>>
      memref.store %80, %arg6[%c3_40] : memref<4xf32, #tpu.memory_space<smem>>
    } else {
    }
    %c1_i32 = arith.constant 1 : i32
    %13 = arith.cmpi eq, %arg0, %c1_i32 : i32
    %14 = arith.extui %13 : i1 to i32
    %c0_i32_7 = arith.constant 0 : i32
    %15 = arith.cmpi ne, %14, %c0_i32_7 : i32
    scf.if %15 {
      %c0 = arith.constant 0 : index
      %c0_11 = arith.constant 0 : index
      %21 = vector.load %arg2[%c0, %c0_11] : memref<16x128xf32, #tpu.memory_space<vmem>>, vector<16x128xf32>
      %c0_12 = arith.constant 0 : index
      %c0_13 = arith.constant 0 : index
      %22 = vector.load %arg3[%c0_12, %c0_13] : memref<16x128xf32, #tpu.memory_space<vmem>>, vector<16x128xf32>
      %c1 = arith.constant 1 : index
      %23 = memref.load %arg6[%c1] : memref<4xf32, #tpu.memory_space<smem>>
      %c2 = arith.constant 2 : index
      %24 = memref.load %arg6[%c2] : memref<4xf32, #tpu.memory_space<smem>>
      %c3 = arith.constant 3 : index
      %25 = memref.load %arg6[%c3] : memref<4xf32, #tpu.memory_space<smem>>
      %26 = vector.broadcast %25 : f32 to vector<16x128xf32>
      %27 = arith.cmpf ogt, %22, %26 : vector<16x128xf32>
      %28 = vector.broadcast %23 : f32 to vector<16x128xf32>
      %29 = arith.mulf %21, %28 : vector<16x128xf32>
      %30 = vector.broadcast %24 : f32 to vector<16x128xf32>
      %31 = arith.addf %29, %30 : vector<16x128xf32>
      %cst_14 = arith.constant 0.000000e+00 : f32
      %32 = vector.broadcast %cst_14 : f32 to vector<16x128xf32>
      %33 = arith.select %27, %31, %32 : vector<16x128xi1>, vector<16x128xf32>
      %cst_15 = arith.constant 1.000000e-01 : f32
      %34 = vector.broadcast %cst_15 : f32 to vector<16x128xf32>
      %35 = arith.cmpf ogt, %33, %34 : vector<16x128xf32>
      %cst_16 = arith.constant -9.99999993E-9 : f32
      %36 = vector.broadcast %cst_16 : f32 to vector<16x128xf32>
      %37 = arith.cmpf ogt, %33, %36 : vector<16x128xf32>
      %c6 = arith.constant 6 : index
      %c0_17 = arith.constant 0 : index
      %c0_18 = arith.constant 0 : index
      %38 = vector.load %arg5[%c6, %c0_17, %c0_18] : memref<10x8x128xf32, #tpu.memory_space<vmem>>, vector<1x8x128xf32>
      %39 = vector.shape_cast %38 : vector<1x8x128xf32> to vector<8x128xf32>
      %cst_19 = arith.constant 0.000000e+00 : f32
      %40 = vector.broadcast %cst_19 : f32 to vector<16x128xf32>
      %41 = arith.select %35, %33, %40 : vector<16x128xi1>, vector<16x128xf32>
      %42 = vector.shape_cast %41 : vector<16x128xf32> to vector<2x8x128xf32>
      %cst_20 = arith.constant dense<0.000000e+00> : vector<8x128xf32>
      %43 = vector.multi_reduction <add>, %42, %cst_20 [0] : vector<2x8x128xf32> to vector<8x128xf32>
      %44 = arith.addf %39, %43 : vector<8x128xf32>
      %c6_21 = arith.constant 6 : index
      %c0_22 = arith.constant 0 : index
      %c0_23 = arith.constant 0 : index
      %45 = vector.load %arg5[%c6_21, %c0_22, %c0_23] : memref<10x8x128xf32, #tpu.memory_space<vmem>>, vector<1x8x128xf32>
      %46 = vector.shape_cast %45 : vector<1x8x128xf32> to vector<8x128xf32>
      %47 = vector.shape_cast %44 : vector<8x128xf32> to vector<1x8x128xf32>
      tpu.vector_store %arg5[%c6_21, %c0_22, %c0_23], %47 {strides = array<i32>} : memref<10x8x128xf32, #tpu.memory_space<vmem>>, vector<1x8x128xf32>,
      %c7 = arith.constant 7 : index
      %c0_24 = arith.constant 0 : index
      %c0_25 = arith.constant 0 : index
      %48 = vector.load %arg5[%c7, %c0_24, %c0_25] : memref<10x8x128xf32, #tpu.memory_space<vmem>>, vector<1x8x128xf32>
      %49 = vector.shape_cast %48 : vector<1x8x128xf32> to vector<8x128xf32>
      %50 = arith.extui %35 : vector<16x128xi1> to vector<16x128xi32>
      %51 = arith.sitofp %50 : vector<16x128xi32> to vector<16x128xf32>
      %52 = vector.shape_cast %51 : vector<16x128xf32> to vector<2x8x128xf32>
      %cst_26 = arith.constant dense<0.000000e+00> : vector<8x128xf32>
      %53 = vector.multi_reduction <add>, %52, %cst_26 [0] : vector<2x8x128xf32> to vector<8x128xf32>
      %54 = arith.addf %49, %53 : vector<8x128xf32>
      %c7_27 = arith.constant 7 : index
      %c0_28 = arith.constant 0 : index
      %c0_29 = arith.constant 0 : index
      %55 = vector.load %arg5[%c7_27, %c0_28, %c0_29] : memref<10x8x128xf32, #tpu.memory_space<vmem>>, vector<1x8x128xf32>
      %56 = vector.shape_cast %55 : vector<1x8x128xf32> to vector<8x128xf32>
      %57 = vector.shape_cast %54 : vector<8x128xf32> to vector<1x8x128xf32>
      tpu.vector_store %arg5[%c7_27, %c0_28, %c0_29], %57 {strides = array<i32>} : memref<10x8x128xf32, #tpu.memory_space<vmem>>, vector<1x8x128xf32>,
      %c8 = arith.constant 8 : index
      %c0_30 = arith.constant 0 : index
      %c0_31 = arith.constant 0 : index
      %58 = vector.load %arg5[%c8, %c0_30, %c0_31] : memref<10x8x128xf32, #tpu.memory_space<vmem>>, vector<1x8x128xf32>
      %59 = vector.shape_cast %58 : vector<1x8x128xf32> to vector<8x128xf32>
      %cst_32 = arith.constant 0.000000e+00 : f32
      %60 = vector.broadcast %cst_32 : f32 to vector<16x128xf32>
      %61 = arith.select %37, %33, %60 : vector<16x128xi1>, vector<16x128xf32>
      %62 = vector.shape_cast %61 : vector<16x128xf32> to vector<2x8x128xf32>
      %cst_33 = arith.constant dense<0.000000e+00> : vector<8x128xf32>
      %63 = vector.multi_reduction <add>, %62, %cst_33 [0] : vector<2x8x128xf32> to vector<8x128xf32>
      %64 = arith.addf %59, %63 : vector<8x128xf32>
      %c8_34 = arith.constant 8 : index
      %c0_35 = arith.constant 0 : index
      %c0_36 = arith.constant 0 : index
      %65 = vector.load %arg5[%c8_34, %c0_35, %c0_36] : memref<10x8x128xf32, #tpu.memory_space<vmem>>, vector<1x8x128xf32>
      %66 = vector.shape_cast %65 : vector<1x8x128xf32> to vector<8x128xf32>
      %67 = vector.shape_cast %64 : vector<8x128xf32> to vector<1x8x128xf32>
      tpu.vector_store %arg5[%c8_34, %c0_35, %c0_36], %67 {strides = array<i32>} : memref<10x8x128xf32, #tpu.memory_space<vmem>>, vector<1x8x128xf32>,
      %c9 = arith.constant 9 : index
      %c0_37 = arith.constant 0 : index
      %c0_38 = arith.constant 0 : index
      %68 = vector.load %arg5[%c9, %c0_37, %c0_38] : memref<10x8x128xf32, #tpu.memory_space<vmem>>, vector<1x8x128xf32>
      %69 = vector.shape_cast %68 : vector<1x8x128xf32> to vector<8x128xf32>
      %70 = arith.extui %37 : vector<16x128xi1> to vector<16x128xi32>
      %71 = arith.sitofp %70 : vector<16x128xi32> to vector<16x128xf32>
      %72 = vector.shape_cast %71 : vector<16x128xf32> to vector<2x8x128xf32>
      %cst_39 = arith.constant dense<0.000000e+00> : vector<8x128xf32>
      %73 = vector.multi_reduction <add>, %72, %cst_39 [0] : vector<2x8x128xf32> to vector<8x128xf32>
      %74 = arith.addf %69, %73 : vector<8x128xf32>
      %c9_40 = arith.constant 9 : index
      %c0_41 = arith.constant 0 : index
      %c0_42 = arith.constant 0 : index
      %75 = vector.load %arg5[%c9_40, %c0_41, %c0_42] : memref<10x8x128xf32, #tpu.memory_space<vmem>>, vector<1x8x128xf32>
      %76 = vector.shape_cast %75 : vector<1x8x128xf32> to vector<8x128xf32>
      %77 = vector.shape_cast %74 : vector<8x128xf32> to vector<1x8x128xf32>
      tpu.vector_store %arg5[%c9_40, %c0_41, %c0_42], %77 {strides = array<i32>} : memref<10x8x128xf32, #tpu.memory_space<vmem>>, vector<1x8x128xf32>,
    } else {
    }
    %c1_i32_8 = arith.constant 1 : i32
    %16 = arith.cmpi eq, %arg0, %c1_i32_8 : i32
    %c0_i32_9 = arith.constant 0 : i32
    %17 = arith.cmpi eq, %arg1, %c0_i32_9 : i32
    %18 = arith.andi %16, %17 : i1
    %19 = arith.extui %18 : i1 to i32
    %c0_i32_10 = arith.constant 0 : i32
    %20 = arith.cmpi ne, %19, %c0_i32_10 : i32
    scf.if %20 {
      %c6 = arith.constant 6 : index
      %c0 = arith.constant 0 : index
      %c0_11 = arith.constant 0 : index
      %21 = vector.load %arg5[%c6, %c0, %c0_11] : memref<10x8x128xf32, #tpu.memory_space<vmem>>, vector<1x8x128xf32>
      %22 = vector.shape_cast %21 : vector<1x8x128xf32> to vector<8x128xf32>
      %23 = vector.shape_cast %22 : vector<8x128xf32> to vector<1x8x128xf32>
      %cst_12 = arith.constant dense<0.000000e+00> : vector<1xf32>
      %24 = vector.multi_reduction <add>, %23, %cst_12 [1, 2] : vector<1x8x128xf32> to vector<1xf32>
      %25 = vector.shape_cast %24 : vector<1xf32> to vector<1x1x1xf32>
      %26 = vector.extract %25[0, 0, 0] : f32 from vector<1x1x1xf32>
      %c7 = arith.constant 7 : index
      %c0_13 = arith.constant 0 : index
      %c0_14 = arith.constant 0 : index
      %27 = vector.load %arg5[%c7, %c0_13, %c0_14] : memref<10x8x128xf32, #tpu.memory_space<vmem>>, vector<1x8x128xf32>
      %28 = vector.shape_cast %27 : vector<1x8x128xf32> to vector<8x128xf32>
      %29 = vector.shape_cast %28 : vector<8x128xf32> to vector<1x8x128xf32>
      %cst_15 = arith.constant dense<0.000000e+00> : vector<1xf32>
      %30 = vector.multi_reduction <add>, %29, %cst_15 [1, 2] : vector<1x8x128xf32> to vector<1xf32>
      %31 = vector.shape_cast %30 : vector<1xf32> to vector<1x1x1xf32>
      %32 = vector.extract %31[0, 0, 0] : f32 from vector<1x1x1xf32>
      %c8 = arith.constant 8 : index
      %c0_16 = arith.constant 0 : index
      %c0_17 = arith.constant 0 : index
      %33 = vector.load %arg5[%c8, %c0_16, %c0_17] : memref<10x8x128xf32, #tpu.memory_space<vmem>>, vector<1x8x128xf32>
      %34 = vector.shape_cast %33 : vector<1x8x128xf32> to vector<8x128xf32>
      %35 = vector.shape_cast %34 : vector<8x128xf32> to vector<1x8x128xf32>
      %cst_18 = arith.constant dense<0.000000e+00> : vector<1xf32>
      %36 = vector.multi_reduction <add>, %35, %cst_18 [1, 2] : vector<1x8x128xf32> to vector<1xf32>
      %37 = vector.shape_cast %36 : vector<1xf32> to vector<1x1x1xf32>
      %38 = vector.extract %37[0, 0, 0] : f32 from vector<1x1x1xf32>
      %c9 = arith.constant 9 : index
      %c0_19 = arith.constant 0 : index
      %c0_20 = arith.constant 0 : index
      %39 = vector.load %arg5[%c9, %c0_19, %c0_20] : memref<10x8x128xf32, #tpu.memory_space<vmem>>, vector<1x8x128xf32>
      %40 = vector.shape_cast %39 : vector<1x8x128xf32> to vector<8x128xf32>
      %41 = vector.shape_cast %40 : vector<8x128xf32> to vector<1x8x128xf32>
      %cst_21 = arith.constant dense<0.000000e+00> : vector<1xf32>
      %42 = vector.multi_reduction <add>, %41, %cst_21 [1, 2] : vector<1x8x128xf32> to vector<1xf32>
      %43 = vector.shape_cast %42 : vector<1xf32> to vector<1x1x1xf32>
      %44 = vector.extract %43[0, 0, 0] : f32 from vector<1x1x1xf32>
      %cst_22 = arith.constant 0.000000e+00 : f32
      %45 = arith.cmpf ogt, %32, %cst_22 : f32
      %46 = arith.divf %26, %32 : f32
      %47 = arith.divf %38, %44 : f32
      %48 = arith.select %45, %46, %47 : f32
      %cst_23 = arith.constant 0.000000e+00 : f32
      %49 = arith.subf %cst_23, %48 : f32
      %c0_24 = arith.constant 0 : index
      %c0_25 = arith.constant 0 : index
      %50 = memref.load %arg4[%c0_24, %c0_25] : memref<1x1xf32, #tpu.memory_space<smem>>
      memref.store %49, %arg4[%c0_24, %c0_25] : memref<1x1xf32, #tpu.memory_space<smem>>
    } else {
    }
    return
  }
  func.func @transform_0(%arg0: i32, %arg1: i32) -> (i32, i32) {
    %c1_i32 = arith.constant 1 : i32
    %0 = arith.subi %c1_i32, %arg0 : i32
    %1 = arith.muli %0, %arg1 : i32
    %c0_i32 = arith.constant 0 : i32
    %2 = arith.subi %c0_i32, %arg1 : i32
    %3 = arith.muli %arg0, %2 : i32
    %4 = arith.addi %1, %3 : i32
    %c0_i32_0 = arith.constant 0 : i32
    %c0_i32_1 = arith.constant 0 : i32
    return %4, %c0_i32_0 : i32, i32
  }
  func.func @transform_1(%arg0: i32, %arg1: i32) -> (i32, i32) {
    %c1_i32 = arith.constant 1 : i32
    %0 = arith.subi %c1_i32, %arg0 : i32
    %1 = arith.muli %0, %arg1 : i32
    %c0_i32 = arith.constant 0 : i32
    %2 = arith.subi %c0_i32, %arg1 : i32
    %3 = arith.muli %arg0, %2 : i32
    %4 = arith.addi %1, %3 : i32
    %c0_i32_0 = arith.constant 0 : i32
    %c0_i32_1 = arith.constant 0 : i32
    return %4, %c0_i32_0 : i32, i32
  }
  func.func @transform_2(%arg0: i32, %arg1: i32) -> (i32, i32) {
    %c0_i32 = arith.constant 0 : i32
    %c0_i32_0 = arith.constant 0 : i32
    %c0_i32_1 = arith.constant 0 : i32
    return %c0_i32, %c0_i32_0 : i32, i32
  }
}

</mosaic_0001>

<bundles_post_ra>
// kernel: tpu_custom_call.1
= control target key start
LH: loop header
LB: loop body
LE: loop exit
PB: predicated region body
PF: predicated region fallthrough
CT: control target
= control target key end

     0   :  { %7 = vsyncpa [#allocation5], 0  ;;  %s1012_s0 = inlined_call_operand.hbm [shape: f32[16,128], index: 0, kind: input, shape index: {}]   ;;  %s1013_s1 = inlined_call_operand.hbm [shape: f32[16,128], index: 1, kind: input, shape index: {}]   ;;  %s1014_s2 = inlined_call_operand.hbm [shape: f32[1,1], index: 2, kind: output, shape index: {}]  }
   0x1   :  { %9 = vsyncpa [#allocation5 + $0x1], 0 }
   0x2   :  { %10 = vsyncpa [#allocation8], 0 }
   0x3   :  { %12 = vsyncpa [#allocation8 + $0x1], 0 }
   0x4   :  { %13 = vsyncpa [#allocation6], 0  ;;  %s893_s9 = smov 0   ;;  %s895_s10 = smov 0  }
   0x5   :  { %s897_s11 = smov 0  }
   0x6 LB: > { %s637_s12 = sadd.s32 4294967295, %s866_s11   ;;  %s31_s13 = sadd.s32 1, %s862_s10  ;;  %s866_s11 = sphi %s897_s11, %s19_s11   ;;  %s862_s10 = sphi %s895_s10, %s1021_s10   ;;  %s858_s9 = sphi %s893_s9, %s1020_s9  }
   0x7   : > { %p33_p0 = scmp.ge.s32.totalorder %s31_s13, 2  ;;  %p713_p1 = scmp.lt.s32.totalorder %s866_s11, 2 }
   0x8   : > { %p714_p2 = scmp.eq.s32.totalorder %s866_s11, 0  ;;  %s868_s14 = smov [#allocation4]  }
   0x9   : > { %s1023_s13 = smov (%p33_p0, %s31_s13), 0  ;;  %s158_s15 = sshll.u32 %s868_s14, 4  ;;  %s159_s15 = int_to_ptr.vmem [resolvable:$true] %s158_s15 }
   0xa   : > { %p914_p3 = pnand %p714_p2, %p713_p1  ;;  %s764_s19 = scalar_lea.hbm %s1012_s0, 256 }
   0xb   : > { %p765_p6 = scmp.ne.s32.totalorder %s1012_s0, %s764_s19  ;;  %p771_p10 = scmp.lt.u32.totalorder %s764_s19, %s1012_s0 }
   0xc   : > { %p766_p7 = pneg %p914_p3 }
   0xe   : > { %p767_p8 = pnand %p766_p7, %p765_p6 }
  0x10   : > { %p768_p9 = pneg %p767_p8 }
  0x12   : > { %p773_p11 = pnand %p771_p10, %p768_p9 }
  0x14   : > { %776 = shalt.err (!%p773_p11)
}
  0x15   : > { %s777_s24 = scalar_lea.vmem %s159_s15, 256  ;;  %s784_s25 = scalar_lea.vmem %s159_s15, 512 }
  0x16   : > { %p778_p12 = scmp.ne.s32.totalorder %s159_s15, %s777_s24  ;;  %p785_p1 = scmp.lt.s32.totalorder %s159_s15, %s159_s15 }
  0x17   : > { %p786_p2 = scmp.lt.s32.totalorder %s784_s25, %s777_s24 }
  0x18   : > { %p780_p13 = pnand %p778_p12, %p766_p7 }
  0x19   : > { %p787_p4 = por %p786_p2, %p785_p1 }
  0x1a   : > { %p781_p0 = pneg %p780_p13 }
  0x1c   : > { %p788_p5 = pnand %p787_p4, %p781_p0 }
  0x1e   : > { %791 = shalt.err (!%p788_p5)
}
  0x1f   : > { %s869_s26 = smov 128   ;;  %s870_s27 = smov 8  }
  0x20   : > { %709 = dma.hbm_to_vmem [thread:$0]  (!%p914_p3), %s1012_s0, 256, %s159_s15, [#allocation5], %s869_s26, %s869_s26, %s870_s27  }
  0x21   : > { %p1016_p6 = scmp.lt.s32.totalorder %s866_s11, 3  ;;  %p1017_p8 = scmp.ge.s32.totalorder %s866_s11, 1 }
  0x22   : > { %s871_s3 = smov [#allocation7]   ;;  %s792_s7 = scalar_lea.hbm %s1013_s1, 256 }
  0x23   : > { %p946_p9 = pnand %p1017_p8, %p1016_p6  ;;  %s184_s4 = sshll.u32 %s871_s3, 4  ;;  %s185_s4 = int_to_ptr.vmem [resolvable:$true] %s184_s4 }
  0x24   : > { %p793_p4 = scmp.ne.s32.totalorder %s1013_s1, %s792_s7  ;;  %p799_p11 = scmp.lt.u32.totalorder %s792_s7, %s1013_s1 }
  0x25   : > { %s1018_s30 = scalar_select %p946_p9, 1, 0 }
  0x26   : > { %p795_p5 = pnand %p793_p4, %p766_p7 }
  0x28   : > { %p796_p10 = pneg %p795_p5 }
  0x2a   : > { %p801_p12 = pnand %p799_p11, %p796_p10 }
  0x2c   : > { %804 = shalt.err (!%p801_p12)
}
  0x2d   : > { %s805_s18 = scalar_lea.vmem %s185_s4, 256  ;;  %s812_s19 = scalar_lea.vmem %s185_s4, 512 }
  0x2e   : > { %p806_p13 = scmp.ne.s32.totalorder %s185_s4, %s805_s18  ;;  %p813_p2 = scmp.lt.s32.totalorder %s185_s4, %s185_s4 }
  0x2f   : > { %p814_p6 = scmp.lt.s32.totalorder %s812_s19, %s805_s18 }
  0x30   : > { %p808_p0 = pnand %p806_p13, %p766_p7 }
  0x31   : > { %p815_p8 = por %p814_p6, %p813_p2 }
  0x32   : > { %p809_p1 = pneg %p808_p0 }
  0x34   : > { %p816_p9 = pnand %p815_p8, %p809_p1 }
  0x36   : > { %819 = shalt.err (!%p816_p9)
}
  0x37   : > { %712 = dma.hbm_to_vmem [thread:$0]  (!%p914_p3), %s1013_s1, 256, %s185_s4, [#allocation8], %s869_s26, %s869_s26, %s870_s27  }
  0x38   : > { %p1019_p4 = scmp.ne.s32.totalorder %s1018_s30, 0 }
  0x39   : > { %p716_p5 = scmp.eq.s32.totalorder (!%p1019_p4), %s637_s12, 0 }
  0x3a   : > { %196 = sbr.rel (%p1019_p4) target bundleno = 826 (0x33a), region = 28 }
  0x41   : > { %845 = dma.done.wait (%p716_p5), [#allocation5], 256  }
  0x42   : > { %847 = vsyncadd (%p716_p5), [#allocation5], 4294967040 }
  0x43   : > { %849 = dma.done.wait (%p716_p5), [#allocation8], 256  }
  0x44   : > { %851 = vsyncadd (%p716_p5), [#allocation8], 4294967040  ;;  %p244_p7 = scmp.eq.s32.totalorder %s858_s9, 0 }
  0x45   : > { %v269_v0 = vld [vmem:[#allocation4] sm:$0x1] (%p244_p7)  ;;  %v872_v1 = vmov (%p244_p7), inf   ;;  %v873_v2 = vmov (%p244_p7), -inf   ;;  %v874_v3 = vmov (%p244_p7), 0.0  }
  0x46   : > { %249 = sbr.rel (!%p244_p7) target bundleno = 126 (0x7e), region = 40  ;;  %250 = vst [vmem:[#allocation2] sm:$0xff] (%p244_p7), %v872_v1  ;;  %252 = vst [vmem:[#allocation2 + $0x8] sm:$0xff] (%p244_p7), %v873_v2 }
  0x47   : > { %254 = vst [vmem:[#allocation2 + $0x10] sm:$0xff] (%p244_p7), %v872_v1  ;;  %256 = vst [vmem:[#allocation2 + $0x18] sm:$0xff] (%p244_p7), %v873_v2 }
  0x48   : > { %258 = vst [vmem:[#allocation2 + $0x20] sm:$0xff] (%p244_p7), %v874_v3  ;;  %260 = vst [vmem:[#allocation2 + $0x28] sm:$0xff] (%p244_p7), %v874_v3 }
  0x49   : > { %262 = vst [vmem:[#allocation2 + $0x30] sm:$0xff] (%p244_p7), %v874_v3  ;;  %264 = vst [vmem:[#allocation2 + $0x38] sm:$0xff] (%p244_p7), %v874_v3 }
  0x4a   : > { %266 = vst [vmem:[#allocation2 + $0x40] sm:$0xff] (%p244_p7), %v874_v3  ;;  %268 = vst [vmem:[#allocation2 + $0x48] sm:$0xff] (%p244_p7), %v874_v3 }
  0x4b   : > { %662 = vpush (%p244_p7), %v269_v0 }
  0x7c   : > { %s663_s16 = spop %662 }
  0x7d   : > { %272 = sst [smem:[#allocation3]] %s663_s16 }
  0x7e PF: > { %p646_p3 = scmp.ne.s32.totalorder %s858_s9, 0 }
  0x7f   : > { %v276_v4 = vld [vmem:[#allocation4] sm:$0xff] (!%p646_p3)  ;;  %v277_v5 = vld [vmem:[#allocation4 + $0x8] sm:$0xff] (!%p646_p3)  ;;  %v284_v6 = vld [vmem:[#allocation2] sm:$0xff] (!%p646_p3)  ;;  %s280_s22 = sld [smem:[#allocation3]] (!%p646_p3) }
  0x80   : > { %275 = sbr.rel (%p646_p3) target bundleno = 143 (0x8f), region = 44  ;;  %v285_v7 = vmin.f32 (!%p646_p3), %v276_v4, %v277_v5  ;;  %v289_v8 = vld [vmem:[#allocation2 + $0x8] sm:$0xff] (!%p646_p3)  ;;  %v290_v9 = vmax.f32 (!%p646_p3), %v276_v4, %v277_v5  ;;  %v278_v10 = vld [vmem:[#allocation7] sm:$0xff] (!%p646_p3)  ;;  %v279_v11 = vld [vmem:[#allocation7 + $0x8] sm:$0xff] (!%p646_p3) }
  0x81   : > { %v294_v12 = vld [vmem:[#allocation2 + $0x10] sm:$0xff] (!%p646_p3)  ;;  %v295_v13 = vmin.f32 (!%p646_p3), %v278_v10, %v279_v11  ;;  %v299_v14 = vld [vmem:[#allocation2 + $0x18] sm:$0xff] (!%p646_p3)  ;;  %v300_v15 = vmax.f32 (!%p646_p3), %v278_v10, %v279_v11  ;;  %v304_v23 = vld [vmem:[#allocation2 + $0x20] sm:$0xff] (!%p646_p3) }
  0x82   : > { %v286_v16 = vmin.f32 (!%p646_p3), %v284_v6, %v285_v7  ;;  %v291_v17 = vmax.f32 (!%p646_p3), %v289_v8, %v290_v9  ;;  %v309_v27 = vld [vmem:[#allocation2 + $0x28] sm:$0xff] (!%p646_p3) }
  0x83   : > { %v296_v18 = vmin.f32 (!%p646_p3), %v294_v12, %v295_v13  ;;  %v301_v19 = vmax.f32 (!%p646_p3), %v299_v14, %v300_v15 }
  0x84   : > { %287 = vst [vmem:[#allocation2] sm:$0xff] (!%p646_p3), %v286_v16  ;;  %292 = vst [vmem:[#allocation2 + $0x8] sm:$0xff] (!%p646_p3), %v291_v17 }
  0x85   : > { %297 = vst [vmem:[#allocation2 + $0x10] sm:$0xff] (!%p646_p3), %v296_v18  ;;  %302 = vst [vmem:[#allocation2 + $0x18] sm:$0xff] (!%p646_p3), %v301_v19  ;;  %v281_v20 = vstv (!%p646_p3), %s280_s22 }
  0x86   : > { %v282_v21 = vsub.f32 (!%p646_p3), %v276_v4, %v281_v20  ;;  %v283_v22 = vsub.f32 (!%p646_p3), %v277_v5, %v281_v20 }
  0x88   : > { %v305_v24 = vadd.f32 %v283_v22, %v282_v21  ;;  %v310_v25 = vmul.f32 %v282_v21, %v282_v21  ;;  %v311_v26 = vmul.f32 %v283_v22, %v283_v22 }
  0x8a   : > { %v306_v28 = vadd.f32 %v305_v24, %v304_v23  ;;  %v312_v29 = vadd.f32 %v311_v26, %v310_v25 }
  0x8c   : > { %307 = vst [vmem:[#allocation2 + $0x20] sm:$0xff] %v306_v28  ;;  %v313_v30 = vadd.f32 %v312_v29, %v309_v27 }
  0x8e   : > { %314 = vst [vmem:[#allocation2 + $0x28] sm:$0xff] %v313_v30 }
  0x8f PF: > { %316 = sbr.rel (!%p244_p7) target bundleno = 506 (0x1fa), region = 48  ;;  %s875_s17 = smov (%p244_p7), 0.0  }
  0x90   : > { %s387_s22 = sld [smem:[#allocation3]] (%p244_p7) }
  0x93   : > { %v317_v32 = vld [vmem:[#allocation2] sm:$0xff] (%p244_p7)  ;;  %v328_v34 = vld [vmem:[#allocation2 + $0x8] sm:$0xff] (%p244_p7) }
  0x94   : > { %v339_v31 = vld [vmem:[#allocation2 + $0x10] sm:$0xff] (%p244_p7)  ;;  %318 = vmin.xlane.f32.xlu0 (%p244_p7), %v317_v32  ;;  %v350_v33 = vld [vmem:[#allocation2 + $0x18] sm:$0xff] (%p244_p7)  ;;  %v361_v36 = vld [vmem:[#allocation2 + $0x20] sm:$0xff] (%p244_p7) }
  0x95   : > { %340 = vmin.xlane.f32.xlu1 (%p244_p7), %v339_v31  ;;  %v372_v35 = vld [vmem:[#allocation2 + $0x28] sm:$0xff] (%p244_p7) }
  0x98   : > { %329 = vmax.xlane.f32.xlu0 %v328_v34 }
  0x99   : > { %351 = vmax.xlane.f32.xlu1 %v350_v33 }
  0x9c   : > { %362 = vadd.xlane.f32.xlu0 %v361_v36 }
  0x9d   : > { %373 = vadd.xlane.f32.xlu1 %v372_v35 }
 0x121   : > { %v319_v38 = vpop.xlane.xlu0 %318 }
 0x122   : > { %v341_v37 = vpop.xlane.xlu1 %340  ;;  %v320_v40 = vrot.slane %v319_v38, 4 }
 0x123   : > { %v342_v39 = vrot.slane %v341_v37, 4 }
 0x124   : > { %v321_v42 = vmin.f32 %v319_v38, %v320_v40 }
 0x125   : > { %v343_v41 = vmin.f32 %v341_v37, %v342_v39  ;;  %v330_v44 = vpop.xlane.xlu0 %329 }
 0x126   : > { %v352_v43 = vpop.xlane.xlu1 %351  ;;  %v322_v46 = vrot.slane %v321_v42, 2  ;;  %v331_v48 = vrot.slane %v330_v44, 4 }
 0x127   : > { %v344_v45 = vrot.slane %v343_v41, 2  ;;  %v353_v47 = vrot.slane %v352_v43, 4 }
 0x128   : > { %v332_v50 = vmax.f32 %v330_v44, %v331_v48  ;;  %v323_v51 = vmin.f32 %v321_v42, %v322_v46 }
 0x129   : > { %v354_v49 = vmax.f32 %v352_v43, %v353_v47  ;;  %v363_v53 = vpop.xlane.xlu0 %362  ;;  %v345_v54 = vmin.f32 %v343_v41, %v344_v45 }
 0x12a   : > { %v374_v52 = vpop.xlane.xlu1 %373  ;;  %v333_v56 = vrot.slane %v332_v50, 2  ;;  %v364_v58 = vrot.slane %v363_v53, 4  ;;  %v324_v59 = vrot.slane %v323_v51, 1 }
 0x12b   : > { %v355_v55 = vrot.slane %v354_v49, 2  ;;  %v375_v57 = vrot.slane %v374_v52, 4  ;;  %v346_v1 = vrot.slane %v345_v54, 1 }
 0x12c   : > { %v365_v61 = vadd.f32 %v364_v58, %v363_v53  ;;  %v334_v62 = vmax.f32 %v332_v50, %v333_v56  ;;  %v325_v0 = vmin.f32 %v323_v51, %v324_v59 }
 0x12d   : > { %v376_v60 = vadd.f32 %v375_v57, %v374_v52  ;;  %v356_v63 = vmax.f32 %v354_v49, %v355_v55  ;;  %v347_v10 = vmin.f32 %v345_v54, %v346_v1 }
 0x12e   : > { %v366_v3 = vrot.slane %v365_v61, 2  ;;  %v335_v4 = vrot.slane %v334_v62, 1  ;;  %664 = vpush %v325_v0 }
 0x12f   : > { %v377_v2 = vrot.slane %v376_v60, 2  ;;  %v357_v5 = vrot.slane %v356_v63, 1 }
 0x130   : > { %v367_v7 = vadd.f32 %v366_v3, %v365_v61  ;;  %v336_v8 = vmax.f32 %v334_v62, %v335_v4 }
 0x131   : > { %v378_v6 = vadd.f32 %v377_v2, %v376_v60  ;;  %v358_v9 = vmax.f32 %v356_v63, %v357_v5 }
 0x132   : > { %666 = vpush %v336_v8  ;;  %v368_v11 = vrot.slane %v367_v7, 1 }
 0x133   : > { %v379_v12 = vrot.slane %v378_v6, 1  ;;  %668 = vpush %v347_v10 }
 0x134   : > { %670 = vpush %v358_v9  ;;  %v369_v13 = vadd.f32 %v368_v11, %v367_v7 }
 0x135   : > { %v380_v14 = vadd.f32 %v379_v12, %v378_v6 }
 0x136   : > { %672 = vpush %v369_v13 }
 0x137   : > { %674 = vpush %v380_v14 }
 0x15f   : > { %s665_s23 = spop %664 }
 0x163   : > { %s667_s24 = spop %666 }
 0x164   : > { %s382_s25 = ssub.f32 %s667_s24, %s665_s23  ;;  %s669_s26 = spop %668 }
 0x165   : > { %s671_s27 = spop %670 }
 0x166   : > { %s383_s28 = sadd.f32 1e-08, %s382_s25 }
 0x167   : > { %s422_s29 = ssub.f32 %s671_s27, %s669_s26  ;;  %s980_s30 = spop %672 }
 0x168   : > { %v384_v15 = vstv %s383_s28  ;;  %s392_s4 = smul.f32 %s980_s30, %s980_s30  ;;  %s675_s8 = spop %674 }
 0x169   : > { %754 = vrcp.f32 %v384_v15  ;;  %s423_s3 = sadd.f32 1e-08, %s422_s29  ;;  %s390_s23 = smul.f32 0.00048828125, %s980_s30 }
 0x16a   : > { %s395_s6 = smul.f32 0.00048828125, %s392_s4 }
 0x16b   : > { %s424_s5 = smul.f32 0.5, %s423_s3  ;;  %s391_s24 = sadd.f32 %s390_s23, %s387_s22 }
 0x16c   : > { %s396_s14 = ssub.f32 %s675_s8, %s395_s6 }
 0x16d   : > { %s425_s7 = sadd.f32 %s669_s26, %s424_s5 }
 0x16e   : > { %s399_s15 = smul.f32 0.0004885198, %s396_s14  ;;  %s418_s26 = ssub.f32 0.0, %s391_s24 }
 0x16f   : > { %427 = sst [smem:[#allocation3 + $0x3]] %s425_s7 }
 0x170   : > { %s400_s18 = smax.f32 %s875_s17, %s399_s15 }
 0x171   : > { %v401_v17 = vstv %s400_s18 }
 0x172   : > { %756 = vrsqrt.f32 %v401_v17  ;;  %vm404_vm0 = vcmp.eq.f32.partialorder %v401_v17, inf  ;;  %v407_v20 = vand.u32 2147483648, %v401_v17  ;;  %vm406_vm1 = vcmp.eq.f32.partialorder %v401_v17, 0.0 }
 0x173   : > { %v755_v16 = vpop.eup %754 }
 0x174   : > { %676 = vpush %v755_v16 }
 0x17c   : > { %v757_v18 = vpop.eup %756 }
 0x17d   : > { %v403_v19 = vmul.f32 %v757_v18, %v401_v17 }
 0x17f   : > { %v405_v21 = vsel %vm404_vm0, %v401_v17, %v403_v19 }
 0x180   : > { %v408_v22 = vsel %vm406_vm1, %v407_v20, %v405_v21 }
 0x181   : > { %678 = vpush %v408_v22 }
 0x1a5   : > { %s677_s19 = spop %676 }
 0x1b2   : > { %s679_s20 = spop %678 }
 0x1b3   : > { %s410_s21 = smul.f32 %s679_s20, %s677_s19 }
 0x1b5   : > { %s411_s16 = sadd.f32 1e-08, %s410_s21 }
 0x1b7   : > { %v412_v23 = vstv %s411_s16 }
 0x1b8   : > { %758 = vrcp.f32 %v412_v23 }
 0x1c2   : > { %v759_v24 = vpop.eup %758 }
 0x1c3   : > { %680 = vpush %v759_v24 }
 0x1f4   : > { %s681_s25 = spop %680 }
 0x1f5   : > { %s415_s27 = smul.f32 %s681_s25, %s677_s19 }
 0x1f7   : > { %417 = sst [smem:[#allocation3 + $0x1]] %s415_s27  ;;  %s419_s28 = smul.f32 %s418_s26, %s415_s27 }
 0x1f9   : > { %421 = sst [smem:[#allocation3 + $0x2]] %s419_s28 }
 0x1fa PF: > { %p428_p9 = scmp.eq.s32.totalorder %s858_s9, 1  ;;  %p647_p10 = scmp.ne.s32.totalorder %s858_s9, 1 }
 0x1fb   : > { %s648_s29 = sld [smem:[#allocation3 + $0x1]] (!%p647_p10)  ;;  %s649_s3 = sld [smem:[#allocation3 + $0x2]] (!%p647_p10)  ;;  %v432_v25 = vld [vmem:[#allocation4] sm:$0xff] (!%p647_p10)  ;;  %v433_v26 = vld [vmem:[#allocation4 + $0x8] sm:$0xff] (!%p647_p10)  ;;  %v876_v42 = vmov (!%p647_p10), 0.0   ;;  %v471_v48 = vld [vmem:[#allocation2 + $0x40] sm:$0xff] (!%p647_p10) }
 0x1fc   : > { %431 = sbr.rel (%p647_p10) target bundleno = 528 (0x210), region = 52  ;;  %s650_s4 = sld [smem:[#allocation3 + $0x3]] (!%p647_p10)  ;;  %v434_v27 = vld [vmem:[#allocation7] sm:$0xff] (!%p647_p10)  ;;  %v435_v28 = vld [vmem:[#allocation7 + $0x8] sm:$0xff] (!%p647_p10)  ;;  %v478_v50 = vld [vmem:[#allocation2 + $0x48] sm:$0xff] (!%p647_p10) }
 0x1fd   : > { %v455_v38 = vld [vmem:[#allocation2 + $0x30] sm:$0xff] (!%p647_p10)  ;;  %v462_v41 = vld [vmem:[#allocation2 + $0x38] sm:$0xff] (!%p647_p10) }
 0x201   : > { %v442_v29 = vstv (!%p647_p10), %s648_s29  ;;  %v445_v33 = vstv (!%p647_p10), %s649_s3 }
 0x202   : > { %v439_v30 = vstv (!%p647_p10), %s650_s4  ;;  %v443_v31 = vmul.f32 (!%p647_p10), %v442_v29, %v432_v25  ;;  %v444_v32 = vmul.f32 (!%p647_p10), %v442_v29, %v433_v26 }
 0x203   : > { %vm440_vm2 = vcmp.gt.f32.partialorder %v434_v27, %v439_v30  ;;  %vm441_vm3 = vcmp.gt.f32.partialorder %v435_v28, %v439_v30 }
 0x204   : > { %v446_v34 = vadd.f32 %v445_v33, %v443_v31  ;;  %v447_v35 = vadd.f32 %v445_v33, %v444_v32 }
 0x206   : > { %v448_v36 = vsel %vm440_vm2, %v446_v34, 0.0  ;;  %v449_v37 = vsel %vm441_vm3, %v447_v35, 0.0 }
 0x207   : > { %vm450_vm4 = vcmp.gt.f32.partialorder %v448_v36, 0.1  ;;  %vm451_vm5 = vcmp.gt.f32.partialorder %v449_v37, 0.1  ;;  %vm452_vm6 = vcmp.gt.f32.partialorder %v448_v36, -1e-08 }
 0x208   : > { %v456_v39 = vsel %vm450_vm4, %v448_v36, 0.0  ;;  %v457_v40 = vsel %vm451_vm5, %v449_v37, 0.0  ;;  %v651_v43 = vsel %vm450_vm4, 1.0, %v876_v42  ;;  %v652_v44 = vsel %vm451_vm5, 1.0, %v876_v42 }
 0x209   : > { %v458_v45 = vadd.f32 %v457_v40, %v456_v39  ;;  %v467_v46 = vadd.f32 %v652_v44, %v651_v43  ;;  %vm453_vm7 = vcmp.gt.f32.partialorder %v449_v37, -1e-08  ;;  %v472_v47 = vsel %vm452_vm6, %v448_v36, 0.0 }
 0x20a   : > { %v473_v49 = vsel %vm453_vm7, %v449_v37, 0.0  ;;  %v653_v51 = vsel %vm452_vm6, 1.0, %v876_v42  ;;  %v654_v52 = vsel %vm453_vm7, 1.0, %v876_v42 }
 0x20b   : > { %v459_v53 = vadd.f32 %v458_v45, %v455_v38  ;;  %v468_v54 = vadd.f32 %v467_v46, %v462_v41  ;;  %v474_v55 = vadd.f32 %v473_v49, %v472_v47  ;;  %v483_v56 = vadd.f32 %v654_v52, %v653_v51 }
 0x20d   : > { %460 = vst [vmem:[#allocation2 + $0x30] sm:$0xff] %v459_v53  ;;  %469 = vst [vmem:[#allocation2 + $0x38] sm:$0xff] %v468_v54  ;;  %v475_v57 = vadd.f32 %v474_v55, %v471_v48  ;;  %v484_v58 = vadd.f32 %v483_v56, %v478_v50 }
 0x20f   : > { %476 = vst [vmem:[#allocation2 + $0x40] sm:$0xff] %v475_v57  ;;  %485 = vst [vmem:[#allocation2 + $0x48] sm:$0xff] %v484_v58 }
 0x210 PF: > { %489 = sbr.rel (!%p428_p9) target bundleno = 811 (0x32b), region = 56 }
 0x214   : > { %v491_v60 = vld [vmem:[#allocation2 + $0x30] sm:$0xff] (%p428_p9)  ;;  %v502_v62 = vld [vmem:[#allocation2 + $0x38] sm:$0xff] (%p428_p9) }
 0x215   : > { %492 = vadd.xlane.f32.xlu0 (%p428_p9), %v491_v60 }
 0x216   : > { %v513_v59 = vld [vmem:[#allocation2 + $0x40] sm:$0xff] (%p428_p9)  ;;  %v524_v61 = vld [vmem:[#allocation2 + $0x48] sm:$0xff] (%p428_p9) }
 0x217   : > { %514 = vadd.xlane.f32.xlu1 %v513_v59 }
 0x219   : > { %503 = vadd.xlane.f32.xlu0 %v502_v62 }
 0x21b   : > { %525 = vadd.xlane.f32.xlu1 %v524_v61 }
 0x2a2   : > { %v493_v0 = vpop.xlane.xlu0 %492 }
 0x2a3   : > { %v494_v2 = vrot.slane %v493_v0, 4 }
 0x2a4   : > { %v515_v63 = vpop.xlane.xlu1 %514 }
 0x2a5   : > { %v516_v1 = vrot.slane %v515_v63, 4  ;;  %v495_v4 = vadd.f32 %v494_v2, %v493_v0 }
 0x2a6   : > { %v504_v6 = vpop.xlane.xlu0 %503 }
 0x2a7   : > { %v517_v3 = vadd.f32 %v516_v1, %v515_v63  ;;  %v496_v8 = vrot.slane %v495_v4, 2  ;;  %v505_v10 = vrot.slane %v504_v6, 4 }
 0x2a8   : > { %v526_v5 = vpop.xlane.xlu1 %525 }
 0x2a9   : > { %v518_v7 = vrot.slane %v517_v3, 2  ;;  %v527_v9 = vrot.slane %v526_v5, 4  ;;  %v506_v12 = vadd.f32 %v505_v10, %v504_v6  ;;  %v497_v13 = vadd.f32 %v496_v8, %v495_v4 }
 0x2ab   : > { %v528_v11 = vadd.f32 %v527_v9, %v526_v5  ;;  %v519_v14 = vadd.f32 %v518_v7, %v517_v3  ;;  %v507_v16 = vrot.slane %v506_v12, 2  ;;  %v498_v17 = vrot.slane %v497_v13, 1 }
 0x2ad   : > { %v529_v15 = vrot.slane %v528_v11, 2  ;;  %v508_v19 = vadd.f32 %v507_v16, %v506_v12  ;;  %v499_v20 = vadd.f32 %v498_v17, %v497_v13  ;;  %v520_v21 = vrot.slane %v519_v14, 1 }
 0x2af   : > { %v530_v18 = vadd.f32 %v529_v15, %v528_v11  ;;  %682 = vpush %v499_v20  ;;  %v509_v22 = vrot.slane %v508_v19, 1  ;;  %v521_v26 = vadd.f32 %v520_v21, %v519_v14 }
 0x2b1   : > { %v531_v23 = vrot.slane %v530_v18, 1  ;;  %v510_v24 = vadd.f32 %v509_v22, %v508_v19 }
 0x2b3   : > { %v532_v25 = vadd.f32 %v531_v23, %v530_v18  ;;  %684 = vpush %v510_v24 }
 0x2b4   : > { %686 = vpush %v521_v26 }
 0x2b5   : > { %688 = vpush %v532_v25 }
 0x2e0   : > { %s683_s9 = spop %682 }
 0x2e4   : > { %s685_s30 = spop %684 }
 0x2e5   : > { %v535_v27 = vstv %s685_s30  ;;  %s687_s5 = spop %686  ;;  %p534_p11 = scmp.gt.f32.partialorder %s685_s30, 0.0 }
 0x2e6   : > { %760 = vrcp.f32 %v535_v27  ;;  %s689_s6 = spop %688 }
 0x2e7   : > { %v539_v28 = vstv %s689_s6 }
 0x2e8   : > { %762 = vrcp.f32 %v539_v28 }
 0x2f0   : > { %v761_v29 = vpop.eup %760 }
 0x2f1   : > { %690 = vpush %v761_v29 }
 0x2f2   : > { %v763_v30 = vpop.eup %762 }
 0x2f3   : > { %692 = vpush %v763_v30 }
 0x322   : > { %s691_s7 = spop %690 }
 0x323   : > { %s538_s8 = smul.f32 %s691_s7, %s683_s9 }
 0x324   : > { %s693_s14 = spop %692 }
 0x325   : > { %s542_s15 = smul.f32 %s693_s14, %s687_s5 }
 0x327   : > { %s1025_s8 = smov (!%p534_p11, %s538_s8), %s542_s15 }
 0x328   : > { %s544_s17 = ssub.f32 0.0, %s1025_s8 }
 0x32a   : > { %546 = sst [smem:[#allocation9]] %s544_s17 }
 0x32b PF: > { %p718_p12 = scmp.eq.s32.totalorder %s637_s12, 1  ;;  %s820_s20 = scalar_lea.hbm %s1014_s2, 16 }
 0x32c   : > { %p821_p13 = scmp.ne.s32.totalorder %s1014_s2, %s820_s20  ;;  %p826_p2 = scmp.lt.u32.totalorder %s820_s20, %s1014_s2 }
 0x32e   : > { %p822_p0 = pnand %p821_p13, %p718_p12 }
 0x330   : > { %p823_p1 = pneg %p822_p0 }
 0x332   : > { %p828_p6 = pnand %p826_p2, %p823_p1 }
 0x334   : > { %831 = shalt.err (!%p828_p6)
}
 0x335   : > { %s877_s24 = smov [#allocation9]  }
 0x336   : > { %703 = dma.smem_to_hbm (%p718_p12), %s877_s24, 16, %s1014_s2, [#allocation6]  }
 0x337   : > { %853 = dma.done.wait (%p718_p12), [#allocation6], 16  }
 0x338   : > { %855 = vsyncadd (%p718_p12), [#allocation6], 4294967280 }
 0x339   : > { %560 = sfence }
 0x33a PF: > { %s19_s11 = sadd.s32 1, %s866_s11   ;;  %s1020_s9 = smov %s862_s10 }
 0x33b   : > { %p16_p8 = scmp.ge.s32.totalorder %s19_s11, 4   ;;  %s1021_s10 = smov %s1023_s13 }
 0x33d   :  { %18 = sbr.rel (!%p16_p8) target bundleno = 6 (0x6), region = 130 }
 0x344   :  { %566 = vsyncpa [#allocation5], 1 }
 0x345   :  { %568 = vsyncpa [#allocation5 + $0x1], 1 }
 0x346   :  { %569 = vsyncpa [#allocation8], 1 }
 0x347   :  { %571 = vsyncpa [#allocation8 + $0x1], 1 }
 0x348   :  { %572 = vsyncpa [#allocation6], 1 }
 0x349   :  { %574 = vsyncpa [#allocation6 + $0x1], 1 }

</bundles_post_ra>
